<compile_context>
chip_gen: v5e
topology: v5e:2x2
jax: 0.10.0
libtpu: 0.0.40
codegen_flags: <defaults>
</compile_context>

<pallas_src>
import functools

import jax
import jax.numpy as jnp
import numpy as np
from jax.experimental import pallas as pl
from jax.experimental.pallas import tpu as pltpu


def _round_up(x, m):
    return ((x + m - 1) // m) * m


def _gem_kernel(p1_ref, p2_ref, x_ref, o_ref, acc_ref, *, eps, h, w, w_tile):
    # p1_ref, p2_ref : SMEM (1,) f32 learnable exponents (p2 cancels out of the fwd)
    # x_ref          : VMEM (c_blk, H, w_tile) input slab
    # o_ref          : VMEM (c_blk, 1, 1) output block (resident across the W axis)
    # acc_ref        : VMEM (c_blk, 1) f32 running max of sum_H(clamp(x,eps)^p1)
    del p2_ref  # forward is mathematically independent of p2 (monotone pow around max)
    wi = pl.program_id(2)
    n_w = pl.num_programs(2)
    p1 = p1_ref[0]

    @pl.when(wi == 0)
    def _init():
        acc_ref[...] = jnp.full(acc_ref.shape, -jnp.inf, acc_ref.dtype)

    x = x_ref[...].astype(jnp.float32)                      # (c_blk, H, w_tile)
    xp = jnp.exp(p1 * jnp.log(jnp.maximum(x, eps)))         # clamp(x,eps)^p1 on the EUP
    col = jnp.sum(xp, axis=1)                               # sum over H -> (c_blk, w_tile)

    if w % w_tile != 0:
        # Ragged last W tile: mask padded lanes out of the max.
        lane = jax.lax.broadcasted_iota(jnp.int32, col.shape, dimension=1)
        col = jnp.where(wi * w_tile + lane < w, col, -jnp.inf)

    tile_max = jnp.max(col, axis=-1, keepdims=True)          # (c_blk, 1)
    acc_ref[...] = jnp.maximum(acc_ref[...], tile_max)

    @pl.when(wi == n_w - 1)
    def _finalize():
        # z = (max_W mean_H clamp(x,eps)^p1)^(1/p1); acc >= H*eps^p1 > 0 so log is safe.
        inv_p1 = 1.0 / p1
        z = jnp.exp(inv_p1 * jnp.log(acc_ref[...] * (1.0 / h)))
        o_ref[...] = z[:, :, None].astype(o_ref.dtype)        # (c_blk, 1, 1)


def _vmem_config():
    """(budget_bytes for the tile footprint, vmem_limit_bytes for CompilerParams)."""
    try:
        kind = jax.devices()[0].device_kind.lower()
    except Exception:  # pragma: no cover - be safe on exotic runtimes
        kind = ""
    if "v5" in kind or "v6" in kind:
        # 128 MiB physical VMEM; default scoped limit (16/32 MiB) must be raised.
        return 56 * 1024 * 1024, 96 * 1024 * 1024
    # v7x-safe default: 64 MiB physical per TensorCore (also fine for unknown gens).
    return 36 * 1024 * 1024, 48 * 1024 * 1024


def _pick_tiles(n, c, h, w, itemsize, budget_bytes):
    """Pick (c_blk, w_tile).  Prefer full-W contiguous channel slabs; only tile W
    when a single channel plane exceeds the budget.  The footprint counts the
    double-buffered input, f32 pow intermediates, padded output blocks and scratch."""

    def footprint(c_blk, w_tile):
        slab = c_blk * h * w_tile
        in_bytes = 2 * slab * itemsize                     # double-buffered input
        f32_tmp = 2 * slab * 4                             # clamp + pow intermediates
        out_bytes = 2 * c_blk * 8 * 128 * itemsize         # padded (c_blk,1,1) out blocks
        acc_bytes = _round_up(c_blk, 8) * 128 * 4          # scratch accumulator
        return in_bytes + f32_tmp + out_bytes + acc_bytes

    # 1) W tile: full W if a single channel plane fits, else 128-aligned chunks
    #    (grid uses cdiv; ragged tail lanes are masked in the kernel).
    w_tile = w
    if footprint(1, w) > budget_bytes:
        w_tile = 128
        for t in (4096, 2048, 1024, 512, 256, 128):
            if footprint(1, t) <= budget_bytes:
                w_tile = t
                break
        w_tile = min(w_tile, _round_up(w, 128))

    # 2) Largest channel-block divisor of C that fits the budget.
    divisors = [d for d in range(1, c + 1) if c % d == 0]
    fitting = [d for d in divisors if footprint(d, w_tile) <= budget_bytes]
    c_blk = max(fitting) if fitting else 1

    # 3) v7x megacore: guarantee >= 2 parallel grid blocks (no cost on v5e/v6e).
    if n * (c // c_blk) < 2 and c > 1:
        halves = [d for d in divisors if d <= c // 2]
        if halves:
            c_blk = max(halves)

    return c_blk, w_tile


@functools.partial(jax.jit, static_argnames=("eps",))
def audio_gem_pooling_2d(x, p1, p2, eps=1e-6):
    n, c, h, w = x.shape
    p1 = jnp.asarray(p1, jnp.float32).reshape((1,))
    p2 = jnp.asarray(p2, jnp.float32).reshape((1,))

    itemsize = np.dtype(x.dtype).itemsize
    budget_bytes, vmem_limit_bytes = _vmem_config()
    c_blk, w_tile = _pick_tiles(n, c, h, w, itemsize, budget_bytes)
    grid = (n, c // c_blk, pl.cdiv(w, w_tile))

    cost = pl.CostEstimate(
        flops=int(3 * n * c * h * w + 2 * n * c * w + 4 * n * c),
        transcendentals=int(2 * n * c * h * w + 2 * n * c),
        bytes_accessed=int(n * c * h * w * itemsize + n * c * itemsize + 8),
    )

    return pl.pallas_call(
        functools.partial(_gem_kernel, eps=float(eps), h=h, w=w, w_tile=w_tile),
        out_shape=jax.ShapeDtypeStruct((n, c, 1, 1), x.dtype),
        grid_spec=pltpu.PrefetchScalarGridSpec(
            num_scalar_prefetch=0,
            grid=grid,
            in_specs=[
                pl.BlockSpec(memory_space=pltpu.MemorySpace.SMEM),   # p1 (1,)
                pl.BlockSpec(memory_space=pltpu.MemorySpace.SMEM),   # p2 (1,)
                pl.BlockSpec((None, c_blk, h, w_tile),
                             lambda ni, ci, wi: (ni, ci, 0, wi)),
            ],
            out_specs=pl.BlockSpec((None, c_blk, 1, 1),
                                   lambda ni, ci, wi: (ni, ci, 0, 0)),
            scratch_shapes=[pltpu.VMEM((c_blk, 1), jnp.float32)],
        ),
        compiler_params=pltpu.CompilerParams(
            dimension_semantics=("parallel", "parallel", "arbitrary"),
            vmem_limit_bytes=vmem_limit_bytes),
        cost_estimate=cost,
    )(p1, p2, x)


def _reference(x, p1, p2, eps):
    # Pure-JAX reference matching the PyTorch module exactly.
    x1 = jnp.maximum(x, eps) ** p1
    x1 = jnp.mean(x1, axis=2, keepdims=True) ** (1.0 / p1)   # avg_pool2d (H, 1)
    x2 = jnp.maximum(x1, eps) ** p2
    x2 = jnp.max(x2, axis=3, keepdims=True) ** (1.0 / p2)    # max_pool2d (1, W)
    return x2


if __name__ == "__main__":
    key = jax.random.PRNGKey(0)
    # Small shapes consistent with the module: batch=2, channels=4, spatial 16x16.
    x = jax.random.normal(key, (2, 4, 16, 16), dtype=jnp.float32)
    p1 = jnp.ones((1,), jnp.float32) * 3.0   # Parameter(torch.ones(1) * p)
    p2 = jnp.ones((1,), jnp.float32) * 3.0
    eps = 1e-6

    out = audio_gem_pooling_2d(x, p1, p2, eps=eps)
    out = jax.block_until_ready(out)

    ref = _reference(x, p1, p2, eps)
    assert out.shape == (2, 4, 1, 1), out.shape
    np.testing.assert_allclose(np.asarray(out), np.asarray(ref),
                               rtol=1e-4, atol=1e-5)

    print("KERNEL_OK")
</pallas_src>

<mosaic_0001>
module attributes {stable_mosaic.version = 11 : i64} {
  func.func @_gem_kernel(%arg0: i32, %arg1: i32, %arg2: i32, %arg3: memref<1xf32, #tpu.memory_space<smem>>, %arg4: memref<1xf32, #tpu.memory_space<smem>>, %arg5: memref<1x4x16x16xf32, #tpu.memory_space<vmem>>, %arg6: memref<1x4x1x1xf32, #tpu.memory_space<vmem>>, %arg7: memref<4x1xf32, #tpu.memory_space<vmem>>) attributes {dimension_semantics = [#tpu.dimension_semantics<parallel>, #tpu.dimension_semantics<parallel>, #tpu.dimension_semantics<arbitrary>], iteration_bounds = array<i64: 2, 1, 1>, scalar_prefetch = 0 : i64, scratch_operands = 1 : i64, tpu.core_type = #tpu.core_type<tc>, window_params = [{transform_indices = @transform_0, window_bounds = array<i64: 1>}, {transform_indices = @transform_1, window_bounds = array<i64: 1>}, {transform_indices = @transform_2, window_bounds = array<i64: 1, 4, 16, 16>}, {transform_indices = @transform_3, window_bounds = array<i64: 1, 4, 1, 1>}]} {
    %c0 = arith.constant 0 : index
    %0 = memref.load %arg3[%c0] : memref<1xf32, #tpu.memory_space<smem>>
    %c0_i32 = arith.constant 0 : i32
    %1 = arith.cmpi eq, %arg2, %c0_i32 : i32
    %2 = arith.extui %1 : i1 to i32
    %c0_i32_0 = arith.constant 0 : i32
    %3 = arith.cmpi ne, %2, %c0_i32_0 : i32
    scf.if %3 {
      %cst_13 = arith.constant 0xFF800000 : f32
      %21 = vector.broadcast %cst_13 : f32 to vector<4x1xf32>
      %c0_14 = arith.constant 0 : index
      %c0_15 = arith.constant 0 : index
      %22 = vector.load %arg7[%c0_14, %c0_15] : memref<4x1xf32, #tpu.memory_space<vmem>>, vector<4x1xf32>
      tpu.vector_store %arg7[%c0_14, %c0_15], %21 {strides = array<i32>} : memref<4x1xf32, #tpu.memory_space<vmem>>, vector<4x1xf32>,
    } else {
    }
    %c0_1 = arith.constant 0 : index
    %c0_2 = arith.constant 0 : index
    %c0_3 = arith.constant 0 : index
    %c0_4 = arith.constant 0 : index
    %4 = vector.load %arg5[%c0_1, %c0_2, %c0_3, %c0_4] : memref<1x4x16x16xf32, #tpu.memory_space<vmem>>, vector<1x4x16x16xf32>
    %5 = vector.shape_cast %4 : vector<1x4x16x16xf32> to vector<4x16x16xf32>
    %cst = arith.constant 9.99999997E-7 : f32
    %6 = vector.broadcast %cst : f32 to vector<4x16x16xf32>
    %7 = arith.maximumf %5, %6 : vector<4x16x16xf32>
    %8 = math.log %7 : vector<4x16x16xf32>
    %9 = vector.broadcast %0 : f32 to vector<4x16x16xf32>
    %10 = arith.mulf %9, %8 : vector<4x16x16xf32>
    %11 = math.exp %10 : vector<4x16x16xf32>
    %cst_5 = arith.constant dense<0.000000e+00> : vector<4x16xf32>
    %12 = vector.multi_reduction <add>, %11, %cst_5 [1] : vector<4x16x16xf32> to vector<4x16xf32>
    %cst_6 = arith.constant dense<0xFF800000> : vector<4xf32>
    %13 = vector.multi_reduction <maximumf>, %12, %cst_6 [1] : vector<4x16xf32> to vector<4xf32>
    %14 = vector.shape_cast %13 : vector<4xf32> to vector<4x1xf32>
    %c0_7 = arith.constant 0 : index
    %c0_8 = arith.constant 0 : index
    %15 = vector.load %arg7[%c0_7, %c0_8] : memref<4x1xf32, #tpu.memory_space<vmem>>, vector<4x1xf32>
    %16 = arith.maximumf %15, %14 : vector<4x1xf32>
    %c0_9 = arith.constant 0 : index
    %c0_10 = arith.constant 0 : index
    %17 = vector.load %arg7[%c0_9, %c0_10] : memref<4x1xf32, #tpu.memory_space<vmem>>, vector<4x1xf32>
    tpu.vector_store %arg7[%c0_9, %c0_10], %16 {strides = array<i32>} : memref<4x1xf32, #tpu.memory_space<vmem>>, vector<4x1xf32>,
    %c0_i32_11 = arith.constant 0 : i32
    %18 = arith.cmpi eq, %arg2, %c0_i32_11 : i32
    %19 = arith.extui %18 : i1 to i32
    %c0_i32_12 = arith.constant 0 : i32
    %20 = arith.cmpi ne, %19, %c0_i32_12 : i32
    scf.if %20 {
      %cst_13 = arith.constant 1.000000e+00 : f32
      %21 = arith.divf %cst_13, %0 : f32
      %c0_14 = arith.constant 0 : index
      %c0_15 = arith.constant 0 : index
      %22 = vector.load %arg7[%c0_14, %c0_15] : memref<4x1xf32, #tpu.memory_space<vmem>>, vector<4x1xf32>
      %cst_16 = arith.constant 6.250000e-02 : f32
      %23 = vector.broadcast %cst_16 : f32 to vector<4x1xf32>
      %24 = arith.mulf %22, %23 : vector<4x1xf32>
      %25 = math.log %24 : vector<4x1xf32>
      %26 = vector.broadcast %21 : f32 to vector<4x1xf32>
      %27 = arith.mulf %26, %25 : vector<4x1xf32>
      %28 = math.exp %27 : vector<4x1xf32>
      %29 = vector.shape_cast %28 : vector<4x1xf32> to vector<4x1x1xf32>
      %c0_17 = arith.constant 0 : index
      %c0_18 = arith.constant 0 : index
      %c0_19 = arith.constant 0 : index
      %c0_20 = arith.constant 0 : index
      %30 = vector.load %arg6[%c0_17, %c0_18, %c0_19, %c0_20] : memref<1x4x1x1xf32, #tpu.memory_space<vmem>>, vector<1x4x1x1xf32>
      %31 = vector.shape_cast %30 : vector<1x4x1x1xf32> to vector<4x1x1xf32>
      %32 = vector.shape_cast %29 : vector<4x1x1xf32> to vector<1x4x1x1xf32>
      tpu.vector_store %arg6[%c0_17, %c0_18, %c0_19, %c0_20], %32 {strides = array<i32>} : memref<1x4x1x1xf32, #tpu.memory_space<vmem>>, vector<1x4x1x1xf32>,
    } else {
    }
    return
  }
  func.func @transform_0(%arg0: i32, %arg1: i32, %arg2: i32) -> i32 {
    %c0_i32 = arith.constant 0 : i32
    %c0_i32_0 = arith.constant 0 : i32
    return %c0_i32 : i32
  }
  func.func @transform_1(%arg0: i32, %arg1: i32, %arg2: i32) -> i32 {
    %c0_i32 = arith.constant 0 : i32
    %c0_i32_0 = arith.constant 0 : i32
    return %c0_i32 : i32
  }
  func.func @transform_2(%arg0: i32, %arg1: i32, %arg2: i32) -> (i32, i32, i32, i32) {
    %c0_i32 = arith.constant 0 : i32
    %c0_i32_0 = arith.constant 0 : i32
    return %arg0, %arg1, %c0_i32, %arg2 : i32, i32, i32, i32
  }
  func.func @transform_3(%arg0: i32, %arg1: i32, %arg2: i32) -> (i32, i32, i32, i32) {
    %c0_i32 = arith.constant 0 : i32
    %c0_i32_0 = arith.constant 0 : i32
    %c0_i32_1 = arith.constant 0 : i32
    return %arg0, %arg1, %c0_i32, %c0_i32_0 : i32, i32, i32, i32
  }
}

</mosaic_0001>

<bundles_post_ra>
// kernel: audio_gem_pooling_2d.1
= control target key start
LH: loop header
LB: loop body
LE: loop exit
PB: predicated region body
PF: predicated region fallthrough
CT: control target
= control target key end

     0   :  { %s824_s0 = inlined_call_operand.<no memory space> [shape: f32[1], index: 0, kind: input, shape index: {}]   ;;  %s825_s1 = inlined_call_operand.<no memory space> [shape: f32[1], index: 1, kind: input, shape index: {}]   ;;  %s826_s2 = inlined_call_operand.hbm [shape: f32[2,4,16,16], index: 2, kind: input, shape index: {}]   ;;  %s827_s3 = inlined_call_operand.vmem [shape: f32[2,4,1,1], index: 3, kind: output, shape index: {}]  }
   0x1   :  { %8 = sst [smem:[#allocation3]] %s824_s0 }
   0x2   :  { %10 = vsyncpa [#allocation6], 0 }
   0x3   :  { %12 = vsyncpa [#allocation6 + $0x1], 0  ;;  %s703_s14 = smov 0   ;;  %s705_s15 = smov 0  }
   0x4   :  { %s707_s16 = smov 0   ;;  %s709_s17 = smov 0  }
   0x5   :  { %s711_s1 = smov 0   ;;  %s713_s18 = smov 0  }
   0x6 LB: > { %s484_s0 = sadd.s32 4294967295, %s675_s18   ;;  %s37_s19 = sadd.s32 1, %s671_s1  ;;  %s675_s18 = sphi %s713_s18, %s18_s18   ;;  %s671_s1 = sphi %s711_s1, %s836_s1   ;;  %s667_s17 = sphi %s709_s17, %s835_s17   ;;  %s663_s16 = sphi %s707_s16, %s834_s16   ;;  %s659_s15 = sphi %s705_s15, %s833_s15   ;;  %s655_s14 = sphi %s703_s14, %s832_s14  }
   0x7   : > { %p39_p0 = scmp.ge.s32.totalorder %s37_s19, 2  ;;  %s90_s20 = sadd.s32 1, %s663_s16 }
   0x8   : > { %p97_p1 = scmp.ne.s32.totalorder %s663_s16, %s659_s15  ;;  %p98_p2 = scmp.eq.s32.totalorder %s675_s18, 0 }
   0x9   : > { %s838_s19 = smov (%p39_p0, %s37_s19), 0  ;;  %p103_p4 = scmp.ne.s32.totalorder %s659_s15, %s655_s14 }
   0xa   : > { %p739_p3 = por %p98_p2, %p97_p1  ;;  %s83_s22 = ssub.s32 %s671_s1, %s838_s19 }
   0xb   : > { %p104_p5 = scmp.eq.s32.totalorder %s484_s0, 0  ;;  %p88_p6 = scmp.eq.s32.totalorder %s83_s22, 0 }
   0xc   : > { %p505_p8 = scmp.lt.s32.totalorder %s675_s18, 2  ;;  %s161_s25 = sand.u32 1, %s663_s16  }
   0xd   : > { %p746_p7 = por %p104_p5, %p103_p4  ;;  %s496_s26 = sshll.u32 %s671_s1, 6 }
   0xe   : > { %s752_s24 = scalar_select %p88_p6, %s663_s16, %s90_s20  }
   0xf   : > { %s488_s27 = sshll.u32 %s161_s25, 6  ;;  %s174_s30 = scalar_lea.hbm %s826_s2, %s496_s26 }
  0x10   : > { %s175_s4 = sshll.u32 %s174_s30, 4  ;;  %s165_s5 = scalar_lea.vmem [#allocation5], %s488_s27  ;;  %s176_s4 = int_to_ptr.hbm [resolvable:$true] %s175_s4 }
  0x11   : > { %s177_s6 = sshll.u32 %s165_s5, 4  ;;  %p502_p9 = pnand %p505_p8, %p739_p3  ;;  %s178_s6 = int_to_ptr.vmem [resolvable:$true] %s177_s6 }
  0x12   : > { %p491_p10 = scmp.ge.s32.totalorder %s675_s18, 1  ;;  %p185_p11 = scmp.lt.s32.totalorder %s675_s18, 3 }
  0x13   : > { %s162_s7 = scalar_lea.sflag [#allocation6], %s161_s25  ;;  %s677_s8 = smov 128  }
  0x14   : > { %s678_s9 = smov 8   ;;  %p186_p12 = pnand %p491_p10, %p185_p11 }
  0x15   : > { %504 = dma.hbm_to_vmem [thread:$0]  (!%p502_p9), %s176_s4, 1024, %s178_s6, %s162_s7, %s677_s8, %s677_s8, %s678_s9  }
  0x16   : > { %189 = sbr.rel (%p186_p12) target bundleno = 228 (0xe4), region = 32  ;;  %s191_s10 = sand.u32 (!%p186_p12), 1, %s659_s15  }
  0x17   : > { %s492_s11 = sshll.u32 (!%p186_p12), %s191_s10, 6  ;;  %s192_s12 = scalar_lea.sflag (!%p186_p12), [#allocation6], %s191_s10 }
  0x18   : > { %s195_s13 = scalar_lea.vmem (!%p186_p12), [#allocation5], %s492_s11 }
  0x1b   : > { %650 = dma.done.wait (%p746_p7), %s192_s12, 1024  }
  0x1c   : > { %652 = vsyncadd (%p746_p7), %s192_s12, 4294966272  ;;  %s232_s14 = sld [smem:[#allocation3]]  ;;  %v239_v0 = vld [vmem:[%s195_s13] sm:$0xff]  ;;  %v240_v1 = vld [vmem:[%s195_s13 + $0x8] sm:$0xff]  ;;  %vm296_vm0 = vcmask 130048   ;;  %vm237_vm1 = vcmask 3072  }
  0x1d   : > { %v241_v2 = vld [vmem:[%s195_s13 + $0x10] sm:$0xff]  ;;  %v242_v3 = vld [vmem:[%s195_s13 + $0x18] sm:$0xff]  ;;  %v243_v4 = vld [vmem:[%s195_s13 + $0x20] sm:$0xff]  ;;  %v247_v6 = vmax.f32 %v239_v0, 1e-06  ;;  %v679_v52 = vmov -inf  }
  0x1e   : > { %v244_v5 = vld [vmem:[%s195_s13 + $0x28] sm:$0xff]  ;;  %v245_v7 = vld [vmem:[%s195_s13 + $0x30] sm:$0xff]  ;;  %v248_v8 = vmax.f32 %v240_v1, 1e-06  ;;  %v249_v9 = vmax.f32 %v241_v2, 1e-06 }
  0x1f   : > { %v246_v10 = vld [vmem:[%s195_s13 + $0x38] sm:$0xff]  ;;  %v250_v11 = vmax.f32 %v242_v3, 1e-06  ;;  %v251_v12 = vmax.f32 %v243_v4, 1e-06  ;;  %557 = vlog2.f32 %v247_v6  ;;  %vm337_vm6 = vcmask 1041409  }
  0x20   : > { %v252_v13 = vmax.f32 %v244_v5, 1e-06  ;;  %559 = vlog2.f32 %v248_v8  ;;  %v253_v14 = vmax.f32 %v245_v7, 1e-06  ;;  %v254_v15 = vmax.f32 %v246_v10, 1e-06 }
  0x21   : > { %561 = vlog2.f32 %v249_v9  ;;  %238 = vst.msk [vmem:[#allocation2] sm:$0xf] %vm237_vm1, %v679_v52  ;;  %vm339_vm7 = vcmask 1042434   ;;  %vm341_vm8 = vcmask 1043459   ;;  %vm344_vm9 = vcmask 125952   ;;  %p224_p13 = scmp.lt.s32.totalorder %s667_s17, 1 }
  0x22   : > { %563 = vlog2.f32 %v250_v11  ;;  %v768_v17 = vstv %s232_s14  ;;  %vm386_vm10 = vcmask 0  }
  0x23   : > { %565 = vlog2.f32 %v251_v12  ;;  %vm361_vm2 = vweird.f32 %v768_v17  ;;  %v365_v55 = vand.u32 2147483647, %v768_v17  ;;  %v367_v59 = vand.u32 2147483648, %v768_v17  ;;  %s840_s17 = smov (!%p224_p13, %s667_s17), 1 }
  0x24   : > { %567 = vlog2.f32 %v252_v13  ;;  %s493_s20 = sshll.u32 %s840_s17, 2 }
  0x25   : > { %v558_v16 = vpop.eup %557  ;;  %569 = vlog2.f32 %v253_v14  ;;  %vm366_vm5 = vcmp.eq.f32.partialorder %v365_v55, 8.507059e+37  ;;  %v368_v10 = vor.u32 1.1754944e-38, %v367_v59  ;;  %s230_s23 = scalar_lea.vmem %s827_s3, %s493_s20 }
  0x26   : > { %v560_v18 = vpop.eup %559  ;;  %v256_v19 = vmul.f32 0.6931472, %v558_v16  ;;  %571 = vlog2.f32 %v254_v15 }
  0x27   : > { %v562_v20 = vpop.eup %561  ;;  %v258_v21 = vmul.f32 0.6931472, %v560_v18  ;;  %573 = vrcp.f32 %v768_v17 }
  0x28   : > { %v564_v22 = vpop.eup %563  ;;  %v260_v23 = vmul.f32 0.6931472, %v562_v20  ;;  %v272_v24 = vmul.f32 %v768_v17, %v256_v19 }
  0x29   : > { %v566_v25 = vpop.eup %565  ;;  %v262_v26 = vmul.f32 0.6931472, %v564_v22  ;;  %v273_v27 = vmul.f32 %v768_v17, %v258_v21 }
  0x2a   : > { %v568_v28 = vpop.eup %567  ;;  %v264_v29 = vmul.f32 0.6931472, %v566_v25  ;;  %v274_v30 = vmul.f32 %v768_v17, %v260_v23  ;;  %v280_v31 = vmul.f32 1.442695, %v272_v24 }
  0x2b   : > { %v570_v32 = vpop.eup %569  ;;  %v266_v33 = vmul.f32 0.6931472, %v568_v28  ;;  %v275_v34 = vmul.f32 %v768_v17, %v262_v26  ;;  %v282_v35 = vmul.f32 1.442695, %v273_v27 }
  0x2c   : > { %v572_v36 = vpop.eup %571  ;;  %v268_v37 = vmul.f32 0.6931472, %v570_v32  ;;  %v276_v38 = vmul.f32 %v768_v17, %v264_v29  ;;  %575 = vpow2.f32 %v280_v31  ;;  %v284_v39 = vmul.f32 1.442695, %v274_v30 }
  0x2d   : > { %v270_v40 = vmul.f32 0.6931472, %v572_v36  ;;  %v277_v41 = vmul.f32 %v768_v17, %v266_v33  ;;  %577 = vpow2.f32 %v282_v35  ;;  %v286_v42 = vmul.f32 1.442695, %v275_v34  ;;  %v574_v48 = vpop.eup %573 }
  0x2e   : > { %v278_v43 = vmul.f32 %v768_v17, %v268_v37  ;;  %579 = vpow2.f32 %v284_v39  ;;  %v288_v44 = vmul.f32 1.442695, %v276_v38  ;;  %v357_v51 = vmul.f32 %v574_v48, %v768_v17 }
  0x2f   : > { %v279_v45 = vmul.f32 %v768_v17, %v270_v40  ;;  %581 = vpow2.f32 %v286_v42  ;;  %v290_v46 = vmul.f32 1.442695, %v277_v41  ;;  %vm362_vm3 = vweird.f32 %v574_v48 }
  0x30   : > { %583 = vpow2.f32 %v288_v44  ;;  %v292_v47 = vmul.f32 1.442695, %v278_v43  ;;  %v358_v58 = vsub.f32 1.0, %v357_v51  ;;  %vm791_vm4 = vmor %vm361_vm2, %vm362_vm3 }
  0x31   : > { %585 = vpow2.f32 %v290_v46  ;;  %v294_v49 = vmul.f32 1.442695, %v279_v45  ;;  %v348_v45 = vld [vmem:[#allocation2] sm:$0xf] }
  0x32   : > { %v576_v50 = vpop.eup %575  ;;  %587 = vpow2.f32 %v292_v47  ;;  %v359_v1 = vmul.f32 %v574_v48, %v358_v58 }
  0x33   : > { %v578_v53 = vpop.eup %577  ;;  %589 = vpow2.f32 %v294_v49  ;;  %v297_v54 = vsel %vm296_vm0, %v576_v50, 0.0 }
  0x34   : > { %v580_v56 = vpop.eup %579  ;;  %v298_v57 = vsel %vm296_vm0, %v578_v53, 0.0  ;;  %v360_v9 = vadd.f32 %v574_v48, %v359_v1 }
  0x35   : > { %v582_v60 = vpop.eup %581  ;;  %v299_v61 = vadd.f32 %v298_v57, %v297_v54  ;;  %v306_v62 = vsel %vm296_vm0, %v580_v56, 0.0 }
  0x36   : > { %v584_v63 = vpop.eup %583  ;;  %v307_v0 = vsel %vm296_vm0, %v582_v60, 0.0  ;;  %v364_v17 = vsel %vm791_vm4, %v574_v48, %v360_v9 }
  0x37   : > { %v586_v2 = vpop.eup %585  ;;  %v300_v3 = vrot.slane %v299_v61, 4  ;;  %v308_v4 = vadd.f32 %v307_v0, %v306_v62  ;;  %v315_v5 = vsel %vm296_vm0, %v584_v63, 0.0  ;;  %v369_v22 = vsel %vm366_vm5, %v368_v10, %v364_v17 }
  0x38   : > { %v588_v7 = vpop.eup %587  ;;  %v316_v8 = vsel %vm296_vm0, %v586_v2, 0.0  ;;  %497 = vpush %v369_v22 }
  0x39   : > { %v590_v11 = vpop.eup %589  ;;  %v301_v12 = vadd.f32 %v300_v3, %v299_v61  ;;  %v309_v13 = vrot.slane %v308_v4, 4  ;;  %v317_v14 = vadd.f32 %v316_v8, %v315_v5  ;;  %v324_v15 = vsel %vm296_vm0, %v588_v7, 0.0 }
  0x3a   : > { %v325_v16 = vsel %vm296_vm0, %v590_v11, 0.0 }
  0x3b   : > { %v302_v18 = vrot.slane %v301_v12, 2  ;;  %v310_v19 = vadd.f32 %v309_v13, %v308_v4  ;;  %v318_v20 = vrot.slane %v317_v14, 4  ;;  %v326_v21 = vadd.f32 %v325_v16, %v324_v15 }
  0x3d   : > { %v303_v23 = vadd.f32 %v302_v18, %v301_v12  ;;  %v311_v24 = vrot.slane %v310_v19, 2  ;;  %v319_v25 = vadd.f32 %v318_v20, %v317_v14  ;;  %v327_v26 = vrot.slane %v326_v21, 4 }
  0x3f   : > { %v304_v27 = vrot.slane %v303_v23, 1  ;;  %v312_v28 = vadd.f32 %v311_v24, %v310_v19  ;;  %v320_v29 = vrot.slane %v319_v25, 2  ;;  %v328_v30 = vadd.f32 %v327_v26, %v326_v21 }
  0x41   : > { %v305_v31 = vadd.f32 %v304_v27, %v303_v23  ;;  %v313_v32 = vrot.slane %v312_v28, 1  ;;  %v321_v33 = vadd.f32 %v320_v29, %v319_v25  ;;  %v329_v34 = vrot.slane %v328_v30, 2 }
  0x43   : > { %v314_v35 = vadd.f32 %v313_v32, %v312_v28  ;;  %v322_v36 = vrot.slane %v321_v33, 1  ;;  %v330_v37 = vadd.f32 %v329_v34, %v328_v30 }
  0x45   : > { %v323_v38 = vadd.f32 %v322_v36, %v321_v33  ;;  %v331_v39 = vrot.slane %v330_v37, 1  ;;  %v338_v40 = vsel %vm337_vm6, %v314_v35, %v305_v31 }
  0x47   : > { %v332_v41 = vadd.f32 %v331_v39, %v330_v37  ;;  %v340_v42 = vsel %vm339_vm7, %v323_v38, %v338_v40 }
  0x49   : > { %v342_v43 = vsel %vm341_vm8, %v332_v41, %v340_v42 }
  0x4a   : > { %v345_v44 = vsel %vm344_vm9, %v342_v43, -inf }
  0x4b   : > { %346 = vmax.xlane.f32.xlu0 %v345_v44 }
  0x69   : > { %s498_s0 = spop %497 }
  0x6a   : > { %v375_v51 = vstv %s498_s0 }
  0xbe   : > { %v347_v46 = vpop.xlane.xlu0 %346 }
  0xbf   : > { %v349_v47 = vmax.f32 %v348_v45, %v347_v46 }
  0xc1   : > { %351 = vst.msk [vmem:[#allocation2] sm:$0xf] %vm237_vm1, %v349_v47 }
  0xc8   : > { %v371_v48 = vld [vmem:[#allocation2] sm:$0xf] }
  0xc9   : > { %v372_v49 = vmul.f32 0.0625, %v371_v48 }
  0xcb   : > { %591 = vlog2.f32 %v372_v49 }
  0xd1   : > { %v592_v50 = vpop.eup %591 }
  0xd2   : > { %v374_v52 = vmul.f32 0.6931472, %v592_v50 }
  0xd4   : > { %v376_v53 = vmul.f32 %v375_v51, %v374_v52 }
  0xd6   : > { %v377_v54 = vmul.f32 1.442695, %v376_v53 }
  0xd8   : > { %593 = vpow2.f32 %v377_v54 }
  0xde   : > { %v594_v55 = vpop.eup %593 }
  0xdf   : > { %v380_v56 = vrot.slane %v594_v55, 1  ;;  %v381_v57 = vrot.slane %v594_v55, 2  ;;  %v382_v58 = vrot.slane %v594_v55, 3  ;;  %387 = vst.msk [vmem:[%s230_s23] sm:$0x1] %vm386_vm10, %v594_v55 }
  0xe1   : > { %388 = vst.msk [vmem:[%s230_s23 + $0x1] sm:$0x1] %vm386_vm10, %v380_v56 }
  0xe2   : > { %389 = vst.msk [vmem:[%s230_s23 + $0x2] sm:$0x1] %vm386_vm10, %v381_v57 }
  0xe3   : > { %390 = vst.msk [vmem:[%s230_s23 + $0x3] sm:$0x1] %vm386_vm10, %v382_v58 }
  0xe4 PF: > { %s18_s18 = sadd.s32 1, %s675_s18   ;;  %s832_s14 = smov %s659_s15 }
  0xe5   : > { %p15_p0 = scmp.ge.s32.totalorder %s18_s18, 4   ;;  %s833_s15 = smov %s663_s16 }
  0xe6   : > { %s834_s16 = smov %s752_s24  ;;  %s835_s17 = smov %s671_s1 }
  0xe7   : > { %s836_s1 = smov %s838_s19  ;;  %17 = sbr.rel (!%p15_p0) target bundleno = 6 (0x6), region = 80 }
  0xec   :  { %419 = vsyncpa [#allocation6], 1 }
  0xed   :  { %421 = vsyncpa [#allocation6 + $0x1], 1 }

</bundles_post_ra>
